<compile_context>
chip_gen: v5e
topology: v5e:2x2
jax: 0.10.0
libtpu: 0.0.40
codegen_flags: <defaults>
</compile_context>

<pallas_src>
import functools

import jax
import jax.numpy as jnp
from jax import lax
from jax.experimental import pallas as pl
from jax.experimental.pallas import tpu as pltpu

NEG_SLOPE = 0.2
BN_EPS = 1e-5
MASK_VALUE = -1e30


def _round_up(v, m):
    return ((v + m - 1) // m) * m


# --------------------------- Kernel A: projections ---------------------------
def proj_kernel(x_ref, w_ref, emb_ref, acat_ref, aemcat_ref,
                xlin_ref, s_ref, *, mxu_dtype):
    md = mxu_dtype
    x_lin = jnp.dot(x_ref[...].astype(md), w_ref[...].astype(md),
                    preferred_element_type=jnp.float32)             # [TM, Fp]
    # merged attention-score projections (s_i in lanes [0:H), s_j in [H:2H))
    s = (jnp.dot(x_lin.astype(md), acat_ref[...].astype(md),
                 preferred_element_type=jnp.float32)
         + jnp.dot(emb_ref[...].astype(md), aemcat_ref[...].astype(md),
                   preferred_element_type=jnp.float32))              # [TM, 128]
    xlin_ref[...] = x_lin.astype(xlin_ref.dtype)
    s_ref[...] = s


# ------------------- Kernel B: masked attention + aggregation ----------------
def attn_kernel(cols_ref, cnt_ref,                       # scalar-prefetch SMEM
                s_ref, sjT_ref, adj_ref, xlin_ref, bias_ref,
                out_ref, bsum_ref, bsq_ref,
                m_ref, l_ref, acc_ref,
                *, heads, out_channels, tm, tk, n_valid,
                xlin_resident, mxu_dtype, exp_dtype):
    H, C = heads, out_channels
    md = mxu_dtype
    i = pl.program_id(0)
    k = pl.program_id(1)

    @pl.when(k == 0)
    def _init():
        m_ref[...] = jnp.full_like(m_ref, -jnp.inf)
        l_ref[...] = jnp.zeros_like(l_ref)
        acc_ref[...] = jnp.zeros_like(acc_ref)

    # Block-sparse skip: only the first cnt[i] (occupied) column tiles do work.
    @pl.when(k < cnt_ref[i])
    def _body():
        s_i = s_ref[...]                            # [TM, 128] f32
        s_jT = sjT_ref[...]                         # [Hp, TK]  f32
        edge = adj_ref[...] != 0                    # [TM, TK]  int8 -> bool
        if xlin_resident:
            c = cols_ref[i, k]
            start = pl.multiple_of(c * tk, tk)
            xlin = xlin_ref[pl.ds(start, tk), :]    # [TK, Fp]
        else:
            xlin = xlin_ref[...]                    # [TK, Fp]

        for h in range(H):                          # static unroll, H small
            sc = s_i[:, h:h + 1] + s_jT[h:h + 1, :]                  # [TM, TK]
            sc = jnp.where(sc >= 0.0, sc, NEG_SLOPE * sc)            # LeakyReLU
            sc = jnp.where(edge, sc, MASK_VALUE)                     # mask
            m_prev = m_ref[:, h:h + 1]
            m_new = jnp.maximum(m_prev, jnp.max(sc, axis=1, keepdims=True))
            alpha = jnp.exp(m_prev - m_new)
            p = jnp.exp((sc - m_new).astype(exp_dtype))              # EUP
            l_ref[:, h:h + 1] = (alpha * l_ref[:, h:h + 1]
                                 + jnp.sum(p.astype(jnp.float32),
                                           axis=1, keepdims=True))
            pv = jnp.dot(p.astype(md), xlin[:, h * C:(h + 1) * C].astype(md),
                         preferred_element_type=jnp.float32)         # [TM, C]
            acc_ref[:, h * C:(h + 1) * C] = (
                alpha * acc_ref[:, h * C:(h + 1) * C] + pv)
            m_ref[:, h:h + 1] = m_new

    @pl.when(k == pl.num_programs(1) - 1)
    def _epilogue():
        for h in range(H):
            inv_l = pl.reciprocal(l_ref[:, h:h + 1], approx=False)
            acc_ref[:, h * C:(h + 1) * C] = acc_ref[:, h * C:(h + 1) * C] * inv_l
        out = acc_ref[...] + bias_ref[...]
        out_ref[...] = out
        # fused BatchNorm partial statistics over the VALID rows of this tile
        rows = lax.broadcasted_iota(jnp.int32, (tm, 1), 0)
        valid = (rows < (n_valid - i * tm)).astype(jnp.float32)      # [TM, 1]
        ov = out * valid
        csum = jnp.sum(ov, axis=0, keepdims=True)                    # [1, Fp]
        csq = jnp.sum(ov * ov, axis=0, keepdims=True)                # [1, Fp]
        bsum_ref[...] = jnp.broadcast_to(csum, bsum_ref.shape)
        bsq_ref[...] = jnp.broadcast_to(csq, bsq_ref.shape)


# -------------------- Kernel C: BatchNorm apply + ReLU -----------------------
def bn_relu_kernel(x_ref, scale_ref, shift_ref, out_ref):
    out_ref[...] = jnp.maximum(x_ref[...] * scale_ref[...] + shift_ref[...], 0.0)


# ------------------------------ plain-JAX glue -------------------------------
def _build_cat_att(att_i, att_j, att_em_i, att_em_j, f_pad, s_pad):
    """Pack att_i/att_j as block-diagonals (and att_em_* transposed) into one
    lane-dense projection pair:  s = x_lin @ a_cat + emb @ aem_cat."""
    h_n, c_n = att_i.shape
    a_cat = jnp.zeros((f_pad, s_pad), jnp.float32)
    aem_cat = jnp.zeros((c_n, s_pad), jnp.float32)
    for h in range(h_n):
        a_cat = a_cat.at[h * c_n:(h + 1) * c_n, h].set(att_i[h])
        a_cat = a_cat.at[h * c_n:(h + 1) * c_n, h_n + h].set(att_j[h])
        aem_cat = aem_cat.at[:, h].set(att_em_i[h])
        aem_cat = aem_cat.at[:, h_n + h].set(att_em_j[h])
    return a_cat, aem_cat


def _build_adjacency(edge_index, n_nodes, n_pad):
    """remove_self_loops + add_self_loops -> int8 mask:
    adj[target, source] = 1 iff edge source->target exists."""
    src, tgt = edge_index[0], edge_index[1]
    keep = (src != tgt).astype(jnp.float32)
    adj = jnp.zeros((n_pad, n_pad), jnp.float32)
    adj = adj.at[tgt, src].max(keep)
    diag = jnp.arange(n_nodes)
    adj = adj.at[diag, diag].set(1.0)
    return (adj > 0.0).astype(jnp.int8)


def _build_tile_schedule(adj_u8, tm, tk):
    """Per-row-tile compacted list of non-empty column tiles + count.
    Padding positions repeat the last valid column index so the block index
    does not change (skipped steps cost no DMA)."""
    n_pad = adj_u8.shape[0]
    n_row, n_col = n_pad // tm, n_pad // tk
    occ = (adj_u8.reshape(n_row, tm, n_col, tk).astype(jnp.int32)
           .sum(axis=(1, 3)) > 0).astype(jnp.int32)                 # [nr, nc]
    cnt = occ.sum(axis=1).astype(jnp.int32)                         # [nr]
    order = jnp.argsort(-occ, axis=1).astype(jnp.int32)             # occupied first
    k_idx = jnp.arange(n_col, dtype=jnp.int32)[None, :]
    last = jnp.take_along_axis(order, jnp.maximum(cnt - 1, 0)[:, None], axis=1)
    cols = jnp.where(k_idx < cnt[:, None], order, last).astype(jnp.int32)
    return cols, cnt


def gnn_layer(x, edge_index, embedding, params, *, heads, out_channels,
              mxu_dtype=jnp.bfloat16, exp_dtype=jnp.float32):
    n, in_ch = x.shape
    h_n, c_n = heads, out_channels
    f = h_n * c_n
    f_pad = _round_up(f, 128)              # lane-dense output slab
    h_pad = _round_up(h_n, 8)              # sublane-friendly score width
    s_pad = 128                            # lane-dense score slab (s_i | s_j)
    assert 2 * h_n <= s_pad

    # Row/column tile sizes: 512 once N is large enough (per-step overhead,
    # HBM roofline, >=2 row tiles for v7x dual-TC at large N); full-array
    # tiles for small N.  tm == tk guarantees diagonal self-loop tiles.
    if n <= 512:
        tm = tk = _round_up(n, 16)
    else:
        tm = tk = 512
    n_pad = _round_up(n, tm)
    n_row, n_col = n_pad // tm, n_pad // tk

    # ---- pad / repack inputs & parameters (one-off glue) ----
    x_p = jnp.pad(x, ((0, n_pad - n), (0, 0)))
    emb_p = jnp.pad(embedding, ((0, n_pad - n), (0, 0)))
    w_p = jnp.pad(params["w"], ((0, 0), (0, f_pad - f)))             # [in, Fp]
    bias_p = jnp.pad(params["bias"], ((0, 0), (0, f_pad - f)))       # [1, Fp]
    a_cat, aem_cat = _build_cat_att(params["att_i"], params["att_j"],
                                    params["att_em_i"], params["att_em_j"],
                                    f_pad, s_pad)
    adj_u8 = _build_adjacency(edge_index, n, n_pad)                  # [Np,Np] i8
    cols, cnt = _build_tile_schedule(adj_u8, tm, tk)

    # ---- Kernel A: linear + merged attention projections ----
    proj = functools.partial(proj_kernel, mxu_dtype=mxu_dtype)
    x_lin, s = pl.pallas_call(
        proj,
        out_shape=(jax.ShapeDtypeStruct((n_pad, f_pad), mxu_dtype),
                   jax.ShapeDtypeStruct((n_pad, s_pad), jnp.float32)),
        grid_spec=pltpu.PrefetchScalarGridSpec(
            num_scalar_prefetch=0, grid=(n_row,),
            in_specs=[
                pl.BlockSpec((tm, in_ch), lambda i: (i, 0)),
                pl.BlockSpec((in_ch, f_pad), lambda i: (0, 0)),
                pl.BlockSpec((tm, c_n), lambda i: (i, 0)),
                pl.BlockSpec((f_pad, s_pad), lambda i: (0, 0)),
                pl.BlockSpec((c_n, s_pad), lambda i: (0, 0)),
            ],
            out_specs=[
                pl.BlockSpec((tm, f_pad), lambda i: (i, 0)),
                pl.BlockSpec((tm, s_pad), lambda i: (i, 0)),
            ]),
        compiler_params=pltpu.CompilerParams(
            dimension_semantics=("parallel",)),
    )(x_p, w_p, emb_p, a_cat, aem_cat)

    # Source-side scores, transposed once (tiny [H, N] array) for Kernel B.
    s_jT = jnp.pad(s[:, h_n:2 * h_n].T, ((0, h_pad - h_n), (0, 0)))  # [Hp, Np]

    # ---- Kernel B: block-sparse masked softmax attention + aggregation ----
    itemsize = jnp.dtype(mxu_dtype).itemsize
    # Keep x_lin VMEM-resident across the column loop when it (incl. double
    # buffer) stays within a v7x-safe budget; otherwise stream occupied tiles.
    xlin_resident = 2 * n_pad * f_pad * itemsize <= 16 * 1024 * 1024
    if xlin_resident:
        xlin_spec = pl.BlockSpec((n_pad, f_pad), lambda i, k, c, m: (0, 0))
    else:
        xlin_spec = pl.BlockSpec((tk, f_pad), lambda i, k, c, m: (c[i, k], 0))

    attn = functools.partial(
        attn_kernel, heads=h_n, out_channels=c_n, tm=tm, tk=tk, n_valid=n,
        xlin_resident=xlin_resident, mxu_dtype=mxu_dtype, exp_dtype=exp_dtype)

    # Footprint-based VMEM limit (only override when it exceeds the default).
    vmem_bytes = (2 * (tm * s_pad * 4 + h_pad * tk * 4 + tm * tk
                       + (n_pad if xlin_resident else tk) * f_pad * itemsize
                       + f_pad * 4 + tm * f_pad * 4 + 2 * 8 * f_pad * 4)
                  + 2 * tm * h_pad * 4 + tm * f_pad * 4)
    vmem_limit = None
    if vmem_bytes > 24 * 1024 * 1024:
        vmem_limit = min(int(vmem_bytes * 1.25) + (2 << 20), 48 * 1024 * 1024)

    cost = pl.CostEstimate(   # advisory, dense upper bound
        flops=2 * h_n * n_pad * n_pad * c_n + 10 * h_n * n_pad * n_pad,
        transcendentals=h_n * n_pad * n_pad,
        bytes_accessed=(n_pad * n_pad
                        + (1 if xlin_resident else n_row) * n_pad * f_pad * itemsize
                        + 2 * n_pad * f_pad * 4))

    out_pre, bn_sum, bn_sq = pl.pallas_call(
        attn,
        out_shape=(jax.ShapeDtypeStruct((n_pad, f_pad), jnp.float32),
                   jax.ShapeDtypeStruct((n_row * 8, f_pad), jnp.float32),
                   jax.ShapeDtypeStruct((n_row * 8, f_pad), jnp.float32)),
        grid_spec=pltpu.PrefetchScalarGridSpec(
            num_scalar_prefetch=2, grid=(n_row, n_col),
            in_specs=[
                pl.BlockSpec((tm, s_pad), lambda i, k, c, m: (i, 0)),
                pl.BlockSpec((h_pad, tk), lambda i, k, c, m: (0, c[i, k])),
                pl.BlockSpec((tm, tk), lambda i, k, c, m: (i, c[i, k])),
                xlin_spec,
                pl.BlockSpec((1, f_pad), lambda i, k, c, m: (0, 0)),
            ],
            out_specs=[
                pl.BlockSpec((tm, f_pad), lambda i, k, c, m: (i, 0)),
                pl.BlockSpec((8, f_pad), lambda i, k, c, m: (i, 0)),
                pl.BlockSpec((8, f_pad), lambda i, k, c, m: (i, 0)),
            ],
            scratch_shapes=[
                pltpu.VMEM((tm, h_pad), jnp.float32),   # running max
                pltpu.VMEM((tm, h_pad), jnp.float32),   # running denom
                pltpu.VMEM((tm, f_pad), jnp.float32),   # output accumulator
            ]),
        compiler_params=pltpu.CompilerParams(
            dimension_semantics=("parallel", "arbitrary"),
            vmem_limit_bytes=vmem_limit),
        cost_estimate=cost,
    )(cols, cnt, s, s_jT, adj_u8, x_lin, bias_p)

    # ---- BatchNorm1d, training-mode batch statistics (from fused partials) --
    mean = bn_sum[::8, :f].sum(axis=0, keepdims=True) / n
    ex2 = bn_sq[::8, :f].sum(axis=0, keepdims=True) / n
    var = jnp.maximum(ex2 - mean * mean, 0.0)
    scale = params["gamma"] * lax.rsqrt(var + BN_EPS)
    shift = params["beta"] - mean * scale
    scale_p = jnp.pad(scale, ((0, 0), (0, f_pad - f)))
    shift_p = jnp.pad(shift, ((0, 0), (0, f_pad - f)))

    # ---- Kernel C: fused affine + ReLU, row-tiled ----
    out_bn = pl.pallas_call(
        bn_relu_kernel,
        out_shape=jax.ShapeDtypeStruct((n_pad, f_pad), jnp.float32),
        grid_spec=pltpu.PrefetchScalarGridSpec(
            num_scalar_prefetch=0, grid=(n_row,),
            in_specs=[
                pl.BlockSpec((tm, f_pad), lambda i: (i, 0)),
                pl.BlockSpec((1, f_pad), lambda i: (0, 0)),
                pl.BlockSpec((1, f_pad), lambda i: (0, 0)),
            ],
            out_specs=pl.BlockSpec((tm, f_pad), lambda i: (i, 0))),
        compiler_params=pltpu.CompilerParams(
            dimension_semantics=("parallel",)),
    )(out_pre, scale_p, shift_p)

    return out_bn[:n, :f]


# ------------------------------ pure-JAX reference ---------------------------
def gnn_layer_ref(x, edge_index, embedding, params, *, heads, out_channels):
    n = x.shape[0]
    h_n, c_n = heads, out_channels
    src, tgt = edge_index[0], edge_index[1]
    keep = (src != tgt).astype(jnp.float32)
    adj = jnp.zeros((n, n), jnp.float32).at[tgt, src].max(keep)
    diag = jnp.arange(n)
    adj = adj.at[diag, diag].set(1.0)

    xl = x @ params["w"]
    outs = []
    for h in range(h_n):
        xh = xl[:, h * c_n:(h + 1) * c_n]
        s_i = (xh * params["att_i"][h]).sum(-1, keepdims=True) \
            + (embedding * params["att_em_i"][h]).sum(-1, keepdims=True)
        s_j = (xh * params["att_j"][h]).sum(-1, keepdims=True) \
            + (embedding * params["att_em_j"][h]).sum(-1, keepdims=True)
        sc = s_i + s_j.T
        sc = jnp.where(sc >= 0, sc, NEG_SLOPE * sc)
        sc = jnp.where(adj > 0, sc, MASK_VALUE)
        p = jax.nn.softmax(sc, axis=1)
        outs.append(p @ xh)
    out = jnp.concatenate(outs, axis=1) + params["bias"]
    mean = out.mean(0, keepdims=True)
    var = ((out - mean) ** 2).mean(0, keepdims=True)
    y = (out - mean) / jnp.sqrt(var + BN_EPS) * params["gamma"] + params["beta"]
    return jnp.maximum(y, 0.0)


if __name__ == "__main__":
    # Small shapes: N nodes, in_channel=32, out_channel=32, heads=2.
    N, IN_CH, OUT_CH, HEADS = 16, 32, 32, 2
    F = HEADS * OUT_CH

    key = jax.random.PRNGKey(0)
    ks = jax.random.split(key, 10)

    x = jax.random.normal(ks[0], (N, IN_CH), jnp.float32)
    embedding = jax.random.normal(ks[1], (N, OUT_CH), jnp.float32)

    # Graph: node i receives edges from sources (i+1), (i+2), (i+3) mod N plus
    # some explicit self-loops (removed then re-added by the layer).
    tgt = jnp.repeat(jnp.arange(N), 3)
    src = (tgt + jnp.tile(jnp.arange(1, 4), N)) % N
    self_loops = jnp.array([0, 3, 7, 11], jnp.int32)
    edge_index = jnp.stack([
        jnp.concatenate([src, self_loops]),
        jnp.concatenate([tgt, self_loops]),
    ]).astype(jnp.int32)                                        # [2, 52]

    glorot_w = jnp.sqrt(6.0 / (IN_CH + F))
    glorot_a = jnp.sqrt(6.0 / (1 + HEADS * OUT_CH))
    params = {
        "w": jax.random.uniform(ks[2], (IN_CH, F), jnp.float32,
                                -glorot_w, glorot_w),           # lin.weight^T
        "att_i": jax.random.uniform(ks[3], (HEADS, OUT_CH), jnp.float32,
                                    -glorot_a, glorot_a),
        "att_j": jax.random.uniform(ks[4], (HEADS, OUT_CH), jnp.float32,
                                    -glorot_a, glorot_a),
        "att_em_i": 0.1 * jax.random.normal(ks[5], (HEADS, OUT_CH), jnp.float32),
        "att_em_j": 0.1 * jax.random.normal(ks[6], (HEADS, OUT_CH), jnp.float32),
        "bias": 0.1 * jax.random.normal(ks[7], (1, F), jnp.float32),
        "gamma": 1.0 + 0.1 * jax.random.normal(ks[8], (1, F), jnp.float32),
        "beta": 0.1 * jax.random.normal(ks[9], (1, F), jnp.float32),
    }

    ref = gnn_layer_ref(x, edge_index, embedding, params,
                        heads=HEADS, out_channels=OUT_CH)

    # f32 MXU operands + f32 exp: tight tolerance.
    out_f32 = gnn_layer(x, edge_index, embedding, params,
                        heads=HEADS, out_channels=OUT_CH,
                        mxu_dtype=jnp.float32, exp_dtype=jnp.float32)
    out_f32 = jax.block_until_ready(out_f32)
    assert out_f32.shape == (N, F)
    assert bool(jnp.all(jnp.isfinite(out_f32)))
    assert bool(jnp.allclose(out_f32, ref, rtol=1e-3, atol=1e-3))

    # bf16 MXU operands + bf16 exp (v6e/v7x fast path; bf16 MXU is also the
    # right choice on v5e, where exp_dtype should stay f32): looser tolerance.
    out_bf16 = gnn_layer(x, edge_index, embedding, params,
                         heads=HEADS, out_channels=OUT_CH,
                         mxu_dtype=jnp.bfloat16, exp_dtype=jnp.bfloat16)
    out_bf16 = jax.block_until_ready(out_bf16)
    assert out_bf16.shape == (N, F)
    assert bool(jnp.all(jnp.isfinite(out_bf16)))
    assert bool(jnp.allclose(out_bf16, ref, rtol=5e-2, atol=5e-2))

    print("KERNEL_OK")
</pallas_src>

<mosaic_0001>
module attributes {stable_mosaic.version = 11 : i64} {
  func.func @proj_kernel(%arg0: i32, %arg1: memref<16x32xf32, #tpu.memory_space<vmem>>, %arg2: memref<32x128xf32, #tpu.memory_space<vmem>>, %arg3: memref<16x32xf32, #tpu.memory_space<vmem>>, %arg4: memref<128x128xf32, #tpu.memory_space<vmem>>, %arg5: memref<32x128xf32, #tpu.memory_space<vmem>>, %arg6: memref<16x128xf32, #tpu.memory_space<vmem>>, %arg7: memref<16x128xf32, #tpu.memory_space<vmem>>) attributes {dimension_semantics = [#tpu.dimension_semantics<parallel>], iteration_bounds = array<i64: 1>, scalar_prefetch = 0 : i64, scratch_operands = 0 : i64, tpu.core_type = #tpu.core_type<tc>, window_params = [{transform_indices = @transform_0, window_bounds = array<i64: 16, 32>}, {pipeline_mode = #tpu.pipeline_mode<synchronous>, transform_indices = @transform_1, window_bounds = array<i64: 32, 128>}, {transform_indices = @transform_2, window_bounds = array<i64: 16, 32>}, {pipeline_mode = #tpu.pipeline_mode<synchronous>, transform_indices = @transform_3, window_bounds = array<i64: 128, 128>}, {pipeline_mode = #tpu.pipeline_mode<synchronous>, transform_indices = @transform_4, window_bounds = array<i64: 32, 128>}, {transform_indices = @transform_5, window_bounds = array<i64: 16, 128>}, {transform_indices = @transform_6, window_bounds = array<i64: 16, 128>}]} {
    %c0 = arith.constant 0 : index
    %c0_0 = arith.constant 0 : index
    %0 = vector.load %arg1[%c0, %c0_0] : memref<16x32xf32, #tpu.memory_space<vmem>>, vector<16x32xf32>
    %c0_1 = arith.constant 0 : index
    %c0_2 = arith.constant 0 : index
    %1 = vector.load %arg2[%c0_1, %c0_2] : memref<32x128xf32, #tpu.memory_space<vmem>>, vector<32x128xf32>
    %cst = arith.constant dense<0.000000e+00> : vector<16x128xf32>
    %2 = tpu.matmul %0, %1, %cst {dimension_numbers = #tpu.dot_dimension_numbers<[1], [0], [0], [1], [0, 0, 1, 1], [], []>} : vector<16x32xf32>, vector<32x128xf32>, vector<16x128xf32> -> vector<16x128xf32>
    %c0_3 = arith.constant 0 : index
    %c0_4 = arith.constant 0 : index
    %3 = vector.load %arg4[%c0_3, %c0_4] : memref<128x128xf32, #tpu.memory_space<vmem>>, vector<128x128xf32>
    %cst_5 = arith.constant dense<0.000000e+00> : vector<16x128xf32>
    %4 = tpu.matmul %2, %3, %cst_5 {dimension_numbers = #tpu.dot_dimension_numbers<[1], [0], [0], [1], [0, 0, 1, 1], [], []>} : vector<16x128xf32>, vector<128x128xf32>, vector<16x128xf32> -> vector<16x128xf32>
    %c0_6 = arith.constant 0 : index
    %c0_7 = arith.constant 0 : index
    %5 = vector.load %arg3[%c0_6, %c0_7] : memref<16x32xf32, #tpu.memory_space<vmem>>, vector<16x32xf32>
    %c0_8 = arith.constant 0 : index
    %c0_9 = arith.constant 0 : index
    %6 = vector.load %arg5[%c0_8, %c0_9] : memref<32x128xf32, #tpu.memory_space<vmem>>, vector<32x128xf32>
    %cst_10 = arith.constant dense<0.000000e+00> : vector<16x128xf32>
    %7 = tpu.matmul %5, %6, %cst_10 {dimension_numbers = #tpu.dot_dimension_numbers<[1], [0], [0], [1], [0, 0, 1, 1], [], []>} : vector<16x32xf32>, vector<32x128xf32>, vector<16x128xf32> -> vector<16x128xf32>
    %8 = arith.addf %4, %7 : vector<16x128xf32>
    %c0_11 = arith.constant 0 : index
    %c0_12 = arith.constant 0 : index
    %9 = vector.load %arg6[%c0_11, %c0_12] : memref<16x128xf32, #tpu.memory_space<vmem>>, vector<16x128xf32>
    tpu.vector_store %arg6[%c0_11, %c0_12], %2 {strides = array<i32>} : memref<16x128xf32, #tpu.memory_space<vmem>>, vector<16x128xf32>,
    %c0_13 = arith.constant 0 : index
    %c0_14 = arith.constant 0 : index
    %10 = vector.load %arg7[%c0_13, %c0_14] : memref<16x128xf32, #tpu.memory_space<vmem>>, vector<16x128xf32>
    tpu.vector_store %arg7[%c0_13, %c0_14], %8 {strides = array<i32>} : memref<16x128xf32, #tpu.memory_space<vmem>>, vector<16x128xf32>,
    return
  }
  func.func @transform_0(%arg0: i32) -> (i32, i32) {
    %c0_i32 = arith.constant 0 : i32
    %c0_i32_0 = arith.constant 0 : i32
    return %arg0, %c0_i32 : i32, i32
  }
  func.func @transform_1(%arg0: i32) -> (i32, i32) {
    %c0_i32 = arith.constant 0 : i32
    %c0_i32_0 = arith.constant 0 : i32
    %c0_i32_1 = arith.constant 0 : i32
    return %c0_i32, %c0_i32_0 : i32, i32
  }
  func.func @transform_2(%arg0: i32) -> (i32, i32) {
    %c0_i32 = arith.constant 0 : i32
    %c0_i32_0 = arith.constant 0 : i32
    return %arg0, %c0_i32 : i32, i32
  }
  func.func @transform_3(%arg0: i32) -> (i32, i32) {
    %c0_i32 = arith.constant 0 : i32
    %c0_i32_0 = arith.constant 0 : i32
    %c0_i32_1 = arith.constant 0 : i32
    return %c0_i32, %c0_i32_0 : i32, i32
  }
  func.func @transform_4(%arg0: i32) -> (i32, i32) {
    %c0_i32 = arith.constant 0 : i32
    %c0_i32_0 = arith.constant 0 : i32
    %c0_i32_1 = arith.constant 0 : i32
    return %c0_i32, %c0_i32_0 : i32, i32
  }
  func.func @transform_5(%arg0: i32) -> (i32, i32) {
    %c0_i32 = arith.constant 0 : i32
    %c0_i32_0 = arith.constant 0 : i32
    return %arg0, %c0_i32 : i32, i32
  }
  func.func @transform_6(%arg0: i32) -> (i32, i32) {
    %c0_i32 = arith.constant 0 : i32
    %c0_i32_0 = arith.constant 0 : i32
    return %arg0, %c0_i32 : i32, i32
  }
}

</mosaic_0001>

<bundles_post_ra>
// kernel: tpu_custom_call.1
= control target key start
LH: loop header
LB: loop body
LE: loop exit
PB: predicated region body
PF: predicated region fallthrough
CT: control target
= control target key end

     0   :  { %12 = vsyncpa [#allocation3], 0  ;;  %s552_s0 = inlined_call_operand.hbm [shape: f32[16,32], index: 0, kind: input, shape index: {}]   ;;  %s553_s1 = inlined_call_operand.hbm [shape: f32[32,128], index: 1, kind: input, shape index: {}]   ;;  %s554_s2 = inlined_call_operand.hbm [shape: f32[16,32], index: 2, kind: input, shape index: {}]   ;;  %s555_s3 = inlined_call_operand.hbm [shape: f32[128,128], index: 3, kind: input, shape index: {}]   ;;  %s556_s4 = inlined_call_operand.hbm [shape: f32[32,128], index: 4, kind: input, shape index: {}]   ;;  %s557_s5 = inlined_call_operand.hbm [shape: f32[16,128], index: 5, kind: output, shape index: {0}]   ;;  %s558_s6 = inlined_call_operand.hbm [shape: f32[16,128], index: 6, kind: output, shape index: {1}]  }
   0x1   :  { %13 = vsyncpa [#allocation6], 0 }
   0x2   :  { %14 = vsyncpa [#allocation9], 0 }
   0x3   :  { %15 = vsyncpa [#allocation4], 0 }
   0x4   :  { %16 = vsyncpa [#allocation13], 0  ;;  %s34_s23 = sshll.u32 %s553_s1, 4  ;;  %s462_s24 = smov [#allocation5]   ;;  %s35_s23 = int_to_ptr.hbm [resolvable:$true] %s34_s23 }
   0x5   :  { %s36_s25 = sshll.u32 %s462_s24, 4  ;;  %s60_s28 = sshll.u32 %s555_s3, 4  ;;  %s37_s25 = int_to_ptr.vmem [resolvable:$true] %s36_s25  ;;  %s61_s28 = int_to_ptr.hbm [resolvable:$true] %s60_s28 }
   0x6   :  { %s463_s29 = smov 128   ;;  %s464_s30 = smov 8  }
   0x7   :  { %42 = dma.hbm_to_vmem [thread:$0]  %s35_s23, 512, %s37_s25, [#allocation6], %s463_s29, %s463_s29, %s464_s30  }
   0x8   :  { %s465_s7 = smov [#allocation8]   ;;  %s21_s1 = sshll.u32 %s552_s0, 4  ;;  %s22_s1 = int_to_ptr.hbm [resolvable:$true] %s21_s1 }
   0x9   :  { %s62_s8 = sshll.u32 %s465_s7, 4  ;;  %s47_s12 = sshll.u32 %s554_s2, 4  ;;  %s63_s8 = int_to_ptr.vmem [resolvable:$true] %s62_s8  ;;  %s48_s12 = int_to_ptr.hbm [resolvable:$true] %s47_s12 }
   0xa   :  { %68 = dma.hbm_to_vmem [thread:$0]  %s61_s28, 2048, %s63_s8, [#allocation9], %s463_s29, %s463_s29, %s464_s30  }
   0xb   :  { %s466_s13 = smov [#allocation2]   ;;  %s467_s15 = smov [#allocation7]  }
   0xc   :  { %s23_s14 = sshll.u32 %s466_s13, 4  ;;  %s49_s0 = sshll.u32 %s467_s15, 4  ;;  %s24_s14 = int_to_ptr.vmem [resolvable:$true] %s23_s14  ;;  %s50_s0 = int_to_ptr.vmem [resolvable:$true] %s49_s0 }
   0xd   :  { %29 = dma.hbm_to_vmem [thread:$0]  %s22_s1, 256, %s24_s14, [#allocation3], %s463_s29, %s463_s29, %s464_s30  }
   0xe   :  { %s73_s18 = sshll.u32 %s556_s4, 4  ;;  %s468_s2 = smov [#allocation10]   ;;  %s74_s18 = int_to_ptr.hbm [resolvable:$true] %s73_s18 }
   0xf   :  { %55 = dma.hbm_to_vmem [thread:$0]  %s48_s12, 256, %s50_s0, [#allocation6], %s463_s29, %s463_s29, %s464_s30  }
  0x10   :  { %s75_s19 = sshll.u32 %s468_s2, 4  ;;  %s76_s19 = int_to_ptr.vmem [resolvable:$true] %s75_s19 }
  0x11   :  { %81 = dma.hbm_to_vmem [thread:$0]  %s74_s18, 512, %s76_s19, [#allocation9], %s463_s29, %s463_s29, %s464_s30  }
  0x12   :  { %452 = dma.done.wait [#allocation3], 256  }
  0x13   :  { %453 = vsyncadd [#allocation3], 4294967040 }
  0x14   :  { %454 = dma.done.wait [#allocation6], 768  }
  0x15   :  { %455 = vsyncadd [#allocation6], 4294966528 }
  0x16   :  { %456 = dma.done.wait [#allocation9], 2560  }
  0x17   :  { %457 = vsyncadd [#allocation9], 4294964736  ;;  %v107_v0 = vld [vmem:[#allocation5 + $0x18] sm:$0xff]  ;;  %v106_v1 = vld [vmem:[#allocation5 + $0x10] sm:$0xff]  ;;  %vm108_vm0 = vcmask 261120   ;;  %s469_s4 = smov [#allocation11]  }
  0x18   :  { %127 = vmatpush.msra.mxu0 %v107_v0  ;;  %v105_v2 = vld [vmem:[#allocation5 + $0x8] sm:$0xff]  ;;  %v152_v4 = vld [vmem:[#allocation8 + $0x70] sm:$0xff]  ;;  %v151_v6 = vld [vmem:[#allocation8 + $0x68] sm:$0xff]  ;;  %s220_s20 = sshll.u32 %s469_s4, 4  ;;  %s222_s23 = sshll.u32 %s557_s5, 4  ;;  %s221_s20 = int_to_ptr.vmem [resolvable:$true] %s220_s20  ;;  %s223_s23 = int_to_ptr.hbm [resolvable:$true] %s222_s23 }
  0x19   :  { %v153_v3 = vld [vmem:[#allocation8 + $0x78] sm:$0xff]  ;;  %v104_v5 = vld [vmem:[#allocation5] sm:$0xff]  ;;  %v102_v7 = vld [vmem:[#allocation2] sm:$0xff]  ;;  %s470_s24 = smov [#allocation12]   ;;  %s235_s28 = sshll.u32 %s558_s6, 4  ;;  %s236_s28 = int_to_ptr.hbm [resolvable:$true] %s235_s28 }
  0x1a   :  { %128 = vmatpush.msra.mxu0 %v106_v1  ;;  %189 = vmatpush.msra.mxu2 %v153_v3  ;;  %v150_v8 = vld [vmem:[#allocation8 + $0x60] sm:$0xff]  ;;  %v149_v9 = vld [vmem:[#allocation8 + $0x58] sm:$0xff]  ;;  %v148_v10 = vld [vmem:[#allocation8 + $0x50] sm:$0xff]  ;;  %s233_s25 = sshll.u32 %s470_s24, 4  ;;  %s234_s25 = int_to_ptr.vmem [resolvable:$true] %s233_s25 }
  0x1b   :  { %259 = vmatpush.msra.mxu3 %v153_v3  ;;  %v147_v11 = vld [vmem:[#allocation8 + $0x48] sm:$0xff]  ;;  %v146_v13 = vld [vmem:[#allocation8 + $0x40] sm:$0xff]  ;;  %v145_v14 = vld [vmem:[#allocation8 + $0x38] sm:$0xff] }
  0x1c   :  { %129 = vmatpush.msra.mxu0 %v105_v2  ;;  %190 = vmatpush.msra.mxu2 %v152_v4  ;;  %v103_v12 = vld [vmem:[#allocation2 + $0x8] sm:$0xff]  ;;  %v144_v15 = vld [vmem:[#allocation8 + $0x30] sm:$0xff]  ;;  %v142_v17 = vld [vmem:[#allocation8 + $0x20] sm:$0xff] }
  0x1d   :  { %260 = vmatpush.msra.mxu3 %v152_v4  ;;  %v143_v16 = vld [vmem:[#allocation8 + $0x28] sm:$0xff]  ;;  %v141_v18 = vld [vmem:[#allocation8 + $0x18] sm:$0xff]  ;;  %v140_v19 = vld [vmem:[#allocation8 + $0x10] sm:$0xff] }
  0x1e   :  { %130 = vmatpush.msra.mxu0 %v104_v5  ;;  %191 = vmatpush.msra.mxu2 %v151_v6  ;;  %v139_v20 = vld [vmem:[#allocation8 + $0x8] sm:$0xff]  ;;  %v159_v21 = vld [vmem:[#allocation10 + $0x18] sm:$0xff]  ;;  %v138_v22 = vld [vmem:[#allocation8] sm:$0xff] }
  0x1f   :  { %255 = vmatmul.msk.f32.vlgmr.msra.gmra.mxu0 %vm108_vm0, %v102_v7  ;;  %261 = vmatpush.msra.mxu3 %v151_v6  ;;  %v158_v23 = vld [vmem:[#allocation10 + $0x10] sm:$0xff]  ;;  %v157_v24 = vld [vmem:[#allocation10 + $0x8] sm:$0xff]  ;;  %v156_v25 = vld [vmem:[#allocation10] sm:$0xff] }
  0x20   :  { %192 = vmatpush.msra.mxu2 %v150_v8  ;;  %178 = vmatpush.msra.mxu1 %v159_v21  ;;  %v154_v26 = vld [vmem:[#allocation7] sm:$0xff]  ;;  %v155_v27 = vld [vmem:[#allocation7 + $0x8] sm:$0xff] }
  0x21   :  { %262 = vmatpush.msra.mxu3 %v150_v8 }
  0x22   :  { %193 = vmatpush.msra.mxu2 %v149_v9  ;;  %179 = vmatpush.msra.mxu1 %v158_v23 }
  0x23   :  { %263 = vmatpush.msra.mxu3 %v149_v9 }
  0x24   :  { %194 = vmatpush.msra.mxu2 %v148_v10  ;;  %180 = vmatpush.msra.mxu1 %v157_v24 }
  0x25   :  { %264 = vmatpush.msra.mxu3 %v148_v10 }
  0x26   :  { %195 = vmatpush.msra.mxu2 %v147_v11  ;;  %181 = vmatpush.msra.mxu1 %v156_v25 }
  0x27   :  { %256 = vmatmul.msk.f32.gmra.mxu0 %vm108_vm0, %v103_v12  ;;  %265 = vmatpush.msra.mxu3 %v147_v11 }
  0x28   :  { %196 = vmatpush.msra.mxu2 %v146_v13  ;;  %257 = vmatmul.msk.f32.vlgmr.msra.gmra.mxu1 %vm108_vm0, %v154_v26 }
  0x29   :  { %266 = vmatpush.msra.mxu3 %v146_v13 }
  0x2a   :  { %197 = vmatpush.msra.mxu2 %v145_v14 }
  0x2b   :  { %267 = vmatpush.msra.mxu3 %v145_v14 }
  0x2c   :  { %198 = vmatpush.msra.mxu2 %v144_v15 }
  0x2d   :  { %268 = vmatpush.msra.mxu3 %v144_v15 }
  0x2e   :  { %199 = vmatpush.msra.mxu2 %v143_v16 }
  0x2f   :  { %269 = vmatpush.msra.mxu3 %v143_v16 }
  0x30   :  { %200 = vmatpush.msra.mxu2 %v142_v17  ;;  %258 = vmatmul.msk.f32.gmra.mxu1 %vm108_vm0, %v155_v27 }
  0x31   :  { %270 = vmatpush.msra.mxu3 %v142_v17 }
  0x32   :  { %201 = vmatpush.msra.mxu2 %v141_v18 }
  0x33   :  { %271 = vmatpush.msra.mxu3 %v141_v18 }
  0x34   :  { %202 = vmatpush.msra.mxu2 %v140_v19 }
  0x35   :  { %272 = vmatpush.msra.mxu3 %v140_v19 }
  0x36   :  { %203 = vmatpush.msra.mxu2 %v139_v20 }
  0x37   :  { %273 = vmatpush.msra.mxu3 %v139_v20 }
  0x38   :  { %204 = vmatpush.msra.mxu2 %v138_v22 }
  0x39   :  { %274 = vmatpush.msra.mxu3 %v138_v22 }
  0x9c   :  { %v132_v28 = vpop.f32.mrf.mxu0 }
  0x9d   :  { %212 = vst [vmem:[#allocation11] sm:$0xff] %v132_v28  ;;  %205 = vmatmul.f32.vlgmr.msra.gmra.mxu2 %v132_v28 }
  0xa4   :  { %v135_v29 = vpop.f32.mrf.mxu0 }
  0xa5   :  { %213 = vst [vmem:[#allocation11 + $0x8] sm:$0xff] %v135_v29  ;;  %208 = vmatmul.f32.vlgmr.msra.gmra.mxu3 %v135_v29  ;;  %v183_v30 = vpop.f32.mrf.mxu1 }
  0xa6   :  { %228 = dma.vmem_to_hbm [thread:$0]  %s221_s20, 256, %s223_s23, [#allocation4], %s463_s29, %s463_s29, %s464_s30  }
  0xad   :  { %v186_v33 = vpop.f32.mrf.mxu1 }
 0x120   :  { %v206_v31 = vpop.f32.mrf.mxu2 }
 0x121   :  { %v207_v32 = vadd.f32 %v206_v31, %v183_v30 }
 0x123   :  { %214 = vst [vmem:[#allocation12] sm:$0xff] %v207_v32 }
 0x128   :  { %v209_v34 = vpop.f32.mrf.mxu3 }
 0x129   :  { %v210_v35 = vadd.f32 %v209_v34, %v186_v33 }
 0x12b   :  { %215 = vst [vmem:[#allocation12 + $0x8] sm:$0xff] %v210_v35 }
 0x12c   :  { %241 = dma.vmem_to_hbm [thread:$0]  %s234_s25, 256, %s236_s28, [#allocation13], %s463_s29, %s463_s29, %s464_s30  }
 0x12d   :  { %458 = dma.done.wait [#allocation4], 256  }
 0x12e   :  { %459 = vsyncadd [#allocation4], 4294967040 }
 0x12f   :  { %460 = dma.done.wait [#allocation13], 256  }
 0x130   :  { %461 = vsyncadd [#allocation13], 4294967040 }
 0x131   :  { %250 = vsyncpa [#allocation3], 1 }
 0x132   :  { %251 = vsyncpa [#allocation6], 1 }
 0x133   :  { %252 = vsyncpa [#allocation9], 1 }
 0x134   :  { %253 = vsyncpa [#allocation4], 1 }
 0x135   :  { %254 = vsyncpa [#allocation13], 1 }

</bundles_post_ra>
